<compile_context>
chip_gen: v7x
topology: tpu7x:2x2x1
jax: 0.10.0
libtpu: 0.0.40
codegen_flags: <defaults>
</compile_context>

<pallas_src>
import functools
import math

import jax
import jax.numpy as jnp
from jax import lax
from jax.experimental import pallas as pl
from jax.experimental.pallas import tpu as pltpu


def _round_up(a, b):
    return (a + b - 1) // b * b


def _arcface_kernel(x_ref, w_ref, label_ref, out_ref,
                    xn_scr, m_scr, l_scr, t_scr,
                    *, cos_m, sin_m, th, mm, scale, num_classes, c_tile):
    """One (B_tile, C_tile) step of the streamed ArcFace + online-CE loss."""
    c = pl.program_id(1)
    n_c = pl.num_programs(1)
    NEG = jnp.float32(-1e30)

    @pl.when(c == 0)
    def _init():
        # Normalize x once per B-tile (f32 math), cache bf16 copy for the MXU.
        x = x_ref[...].astype(jnp.float32)                      # (Bt, Dp)
        inv = lax.rsqrt(jnp.maximum(jnp.sum(x * x, axis=-1, keepdims=True),
                                    1e-24))
        xn_scr[...] = (x * inv).astype(jnp.bfloat16)
        m_scr[...] = jnp.full_like(m_scr, NEG)                  # running max
        l_scr[...] = jnp.zeros_like(l_scr)                      # running sum
        t_scr[...] = jnp.zeros_like(t_scr)                      # target logit

    # Normalize this weight tile (f32 math), feed the MXU in bf16.
    w = w_ref[...].astype(jnp.float32)                          # (Ct, Dp)
    winv = lax.rsqrt(jnp.maximum(jnp.sum(w * w, axis=-1, keepdims=True),
                                 1e-24))
    wn = (w * winv).astype(jnp.bfloat16)

    # cosine = x_norm @ w_norm.T without an explicit transpose:
    # contract D (axis 1) of both operands; f32 accumulation on the MXU.
    cosine = lax.dot_general(
        xn_scr[...], wn,
        dimension_numbers=(((1,), (1,)), ((), ())),
        preferred_element_type=jnp.float32)                     # (Bt, Ct)

    # phi = cos(theta + m), with the easy-margin-off fallback.
    sine = jnp.sqrt(jnp.maximum(1.0 - cosine * cosine, 0.0))    # clamp: no NaN
    phi = cosine * cos_m - sine * sin_m
    phi = jnp.where(cosine > th, phi, cosine - mm)

    # one-hot select fused as a masked where (no (B,C) multiply chain).
    label = label_ref[...]                                      # (Bt, 1) int32
    bt, ct = cosine.shape
    col = c * c_tile + lax.broadcasted_iota(jnp.int32, (bt, ct), 1)
    is_target = col == label
    logit = jnp.where(is_target, phi, cosine) * scale
    # Padded class columns must never contribute to the logsumexp.
    logit = jnp.where(col < num_classes, logit, NEG)

    # Online logsumexp update.
    m_prev = m_scr[...]
    m_new = jnp.maximum(m_prev, jnp.max(logit, axis=-1, keepdims=True))
    alpha = jnp.exp(m_prev - m_new)
    l_scr[...] = alpha * l_scr[...] + jnp.sum(jnp.exp(logit - m_new),
                                              axis=-1, keepdims=True)
    t_scr[...] = t_scr[...] + jnp.sum(jnp.where(is_target, logit, 0.0),
                                      axis=-1, keepdims=True)
    m_scr[...] = m_new

    @pl.when(c == n_c - 1)
    def _finalize():
        # per-row CE loss:  logsumexp(logits) - logit[label]
        out_ref[...] = m_scr[...] + jnp.log(l_scr[...]) - t_scr[...]


def arcface_loss(x, weight, label, *, scale_factor=64.0, margin=0.5,
                 b_tile=None, c_tile=None):
    """Mean cross-entropy ArcFace loss. x:(B,D) f32, weight:(C,D), label:(B,)."""
    B, D = x.shape
    C, D2 = weight.shape
    assert D == D2

    cos_m = math.cos(margin)
    sin_m = math.sin(margin)
    th = math.cos(math.pi - margin)
    mm = math.sin(math.pi - margin) * margin

    # Lane/sublane-aligned tiles; sized well under the default/explicit VMEM
    # scoped limit on all of v5e / v6e / v7x (weight tile double-buffered).
    if b_tile is None:
        b_tile = min(128, _round_up(B, 8))
    if c_tile is None:
        c_tile = min(1024, _round_up(C, 128))

    B_pad = _round_up(B, b_tile)
    C_pad = _round_up(C, c_tile)
    D_pad = _round_up(D, 128)

    x_p = jnp.pad(x.astype(jnp.float32), ((0, B_pad - B), (0, D_pad - D)))
    w_p = jnp.pad(weight.astype(jnp.float32), ((0, C_pad - C), (0, D_pad - D)))
    lbl = jnp.pad(label.reshape(-1).astype(jnp.int32),
                  (0, B_pad - B)).reshape(B_pad, 1)

    grid = (B_pad // b_tile, C_pad // c_tile)

    kernel = functools.partial(
        _arcface_kernel,
        cos_m=cos_m, sin_m=sin_m, th=th, mm=mm,
        scale=scale_factor, num_classes=C, c_tile=c_tile)

    cost = pl.CostEstimate(
        flops=2 * B_pad * C_pad * D_pad + 10 * B_pad * C_pad,
        transcendentals=B_pad * C_pad,
        bytes_accessed=(grid[0] * C_pad * D_pad + B_pad * D_pad) * 4
        + B_pad * 8)

    per_row = pl.pallas_call(
        kernel,
        out_shape=jax.ShapeDtypeStruct((B_pad, 1), jnp.float32),
        grid_spec=pltpu.PrefetchScalarGridSpec(
            num_scalar_prefetch=0,
            grid=grid,
            in_specs=[
                pl.BlockSpec((b_tile, D_pad), lambda b, c: (b, 0)),   # x
                pl.BlockSpec((c_tile, D_pad), lambda b, c: (c, 0)),   # weight
                pl.BlockSpec((b_tile, 1), lambda b, c: (b, 0)),       # label
            ],
            out_specs=pl.BlockSpec((b_tile, 1), lambda b, c: (b, 0)),
            scratch_shapes=[
                pltpu.VMEM((b_tile, D_pad), jnp.bfloat16),  # cached x_norm
                pltpu.VMEM((b_tile, 1), jnp.float32),       # running max
                pltpu.VMEM((b_tile, 1), jnp.float32),       # running sum
                pltpu.VMEM((b_tile, 1), jnp.float32),       # target logit
            ]),
        compiler_params=pltpu.CompilerParams(
            dimension_semantics=("parallel", "arbitrary"),
            vmem_limit_bytes=32 * 1024 * 1024),
        cost_estimate=cost,
    )(x_p, w_p, lbl)

    # Drop padded batch rows; mean reduction (nn.CrossEntropyLoss default).
    return jnp.sum(per_row[:B, 0]) / jnp.float32(B)


if __name__ == "__main__":
    # Small synthetic problem: batch=8, in_features=32, out_features=16.
    B, IN_F, OUT_F = 8, 32, 16
    SCALE, MARGIN = 64.0, 0.5

    key = jax.random.PRNGKey(0)
    kx, kw, kl = jax.random.split(key, 3)

    x = jax.random.normal(kx, (B, IN_F), dtype=jnp.float32)

    # Deterministic xavier_uniform_-style init for weight (out_features, in_features).
    bound = math.sqrt(6.0 / (IN_F + OUT_F))
    weight = jax.random.uniform(kw, (OUT_F, IN_F), dtype=jnp.float32,
                                minval=-bound, maxval=bound)

    label = jax.random.randint(kl, (B,), 0, OUT_F, dtype=jnp.int32)

    loss = arcface_loss(x, weight, label, scale_factor=SCALE, margin=MARGIN)
    jax.block_until_ready(loss)

    # Pure-JAX reference, mirroring the kernel's bf16 MXU feed (f32 accumulate).
    def ref(x, w, label):
        xn = x / jnp.maximum(jnp.linalg.norm(x, axis=-1, keepdims=True), 1e-12)
        wn = w / jnp.maximum(jnp.linalg.norm(w, axis=-1, keepdims=True), 1e-12)
        cosine = jnp.dot(xn.astype(jnp.bfloat16), wn.astype(jnp.bfloat16).T,
                         preferred_element_type=jnp.float32)
        sine = jnp.sqrt(jnp.maximum(1.0 - cosine ** 2, 0.0))
        phi = cosine * math.cos(MARGIN) - sine * math.sin(MARGIN)
        phi = jnp.where(cosine > math.cos(math.pi - MARGIN), phi,
                        cosine - math.sin(math.pi - MARGIN) * MARGIN)
        one_hot = jax.nn.one_hot(label, cosine.shape[1], dtype=jnp.float32)
        logit = (one_hot * phi + (1.0 - one_hot) * cosine) * SCALE
        logp = jax.nn.log_softmax(logit, axis=-1)
        return -jnp.mean(jnp.take_along_axis(logp, label[:, None], axis=1))

    ref_loss = ref(x, weight, label)
    assert jnp.allclose(loss, ref_loss, rtol=5e-3, atol=5e-3), (loss, ref_loss)
    assert jnp.isfinite(loss)

    print("KERNEL_OK")
</pallas_src>

<mosaic_0001>
module attributes {stable_mosaic.version = 11 : i64} {
  func.func @_arcface_kernel(%arg0: i32, %arg1: i32, %arg2: memref<8x128xf32, #tpu.memory_space<vmem>>, %arg3: memref<128x128xf32, #tpu.memory_space<vmem>>, %arg4: memref<8x1xi32, #tpu.memory_space<vmem>>, %arg5: memref<8x1xf32, #tpu.memory_space<vmem>>, %arg6: memref<8x128xbf16, #tpu.memory_space<vmem>>, %arg7: memref<8x1xf32, #tpu.memory_space<vmem>>, %arg8: memref<8x1xf32, #tpu.memory_space<vmem>>, %arg9: memref<8x1xf32, #tpu.memory_space<vmem>>) attributes {dimension_semantics = [#tpu.dimension_semantics<parallel>, #tpu.dimension_semantics<arbitrary>], iteration_bounds = array<i64: 1, 1>, scalar_prefetch = 0 : i64, scratch_operands = 4 : i64, tpu.core_type = #tpu.core_type<tc>, window_params = [{transform_indices = @transform_0, window_bounds = array<i64: 8, 128>}, {transform_indices = @transform_1, window_bounds = array<i64: 128, 128>}, {transform_indices = @transform_2, window_bounds = array<i64: 8, 1>}, {transform_indices = @transform_3, window_bounds = array<i64: 8, 1>}]} {
    %c0_i32 = arith.constant 0 : i32
    %0 = arith.cmpi eq, %arg1, %c0_i32 : i32
    %1 = arith.extui %0 : i1 to i32
    %cst = arith.constant -1.000000e+30 : f32
    %c0_i32_0 = arith.constant 0 : i32
    %2 = arith.cmpi ne, %1, %c0_i32_0 : i32
    scf.if %2 {
      %c0_35 = arith.constant 0 : index
      %c0_36 = arith.constant 0 : index
      %71 = vector.load %arg2[%c0_35, %c0_36] : memref<8x128xf32, #tpu.memory_space<vmem>>, vector<8x128xf32>
      %72 = arith.mulf %71, %71 : vector<8x128xf32>
      %cst_37 = arith.constant dense<0.000000e+00> : vector<8xf32>
      %73 = vector.multi_reduction <add>, %72, %cst_37 [1] : vector<8x128xf32> to vector<8xf32>
      %74 = vector.shape_cast %73 : vector<8xf32> to vector<8x1xf32>
      %cst_38 = arith.constant 1.000000e-24 : f32
      %75 = vector.broadcast %cst_38 : f32 to vector<8x1xf32>
      %76 = arith.maximumf %74, %75 : vector<8x1xf32>
      %77 = math.rsqrt %76 : vector<8x1xf32>
      %78 = vector.broadcast %77 : vector<8x1xf32> to vector<8x128xf32>
      %79 = arith.mulf %71, %78 : vector<8x128xf32>
      %80 = arith.truncf %79 : vector<8x128xf32> to vector<8x128xbf16>
      %c0_39 = arith.constant 0 : index
      %c0_40 = arith.constant 0 : index
      %81 = vector.load %arg6[%c0_39, %c0_40] : memref<8x128xbf16, #tpu.memory_space<vmem>>, vector<8x128xbf16>
      tpu.vector_store %arg6[%c0_39, %c0_40], %80 {strides = array<i32>} : memref<8x128xbf16, #tpu.memory_space<vmem>>, vector<8x128xbf16>,
      %82 = vector.broadcast %cst : f32 to vector<8x1xf32>
      %c0_41 = arith.constant 0 : index
      %c0_42 = arith.constant 0 : index
      %83 = vector.load %arg7[%c0_41, %c0_42] : memref<8x1xf32, #tpu.memory_space<vmem>>, vector<8x1xf32>
      tpu.vector_store %arg7[%c0_41, %c0_42], %82 {strides = array<i32>} : memref<8x1xf32, #tpu.memory_space<vmem>>, vector<8x1xf32>,
      %cst_43 = arith.constant 0.000000e+00 : f32
      %84 = vector.broadcast %cst_43 : f32 to vector<8x1xf32>
      %c0_44 = arith.constant 0 : index
      %c0_45 = arith.constant 0 : index
      %85 = vector.load %arg8[%c0_44, %c0_45] : memref<8x1xf32, #tpu.memory_space<vmem>>, vector<8x1xf32>
      tpu.vector_store %arg8[%c0_44, %c0_45], %84 {strides = array<i32>} : memref<8x1xf32, #tpu.memory_space<vmem>>, vector<8x1xf32>,
      %cst_46 = arith.constant 0.000000e+00 : f32
      %86 = vector.broadcast %cst_46 : f32 to vector<8x1xf32>
      %c0_47 = arith.constant 0 : index
      %c0_48 = arith.constant 0 : index
      %87 = vector.load %arg9[%c0_47, %c0_48] : memref<8x1xf32, #tpu.memory_space<vmem>>, vector<8x1xf32>
      tpu.vector_store %arg9[%c0_47, %c0_48], %86 {strides = array<i32>} : memref<8x1xf32, #tpu.memory_space<vmem>>, vector<8x1xf32>,
    } else {
    }
    %c0 = arith.constant 0 : index
    %c0_1 = arith.constant 0 : index
    %3 = vector.load %arg3[%c0, %c0_1] : memref<128x128xf32, #tpu.memory_space<vmem>>, vector<128x128xf32>
    %4 = arith.mulf %3, %3 : vector<128x128xf32>
    %cst_2 = arith.constant dense<0.000000e+00> : vector<128xf32>
    %5 = vector.multi_reduction <add>, %4, %cst_2 [1] : vector<128x128xf32> to vector<128xf32>
    %6 = vector.shape_cast %5 : vector<128xf32> to vector<128x1xf32>
    %cst_3 = arith.constant 1.000000e-24 : f32
    %7 = vector.broadcast %cst_3 : f32 to vector<128x1xf32>
    %8 = arith.maximumf %6, %7 : vector<128x1xf32>
    %9 = math.rsqrt %8 : vector<128x1xf32>
    %10 = vector.broadcast %9 : vector<128x1xf32> to vector<128x128xf32>
    %11 = arith.mulf %3, %10 : vector<128x128xf32>
    %12 = arith.truncf %11 : vector<128x128xf32> to vector<128x128xbf16>
    %c0_4 = arith.constant 0 : index
    %c0_5 = arith.constant 0 : index
    %13 = vector.load %arg6[%c0_4, %c0_5] : memref<8x128xbf16, #tpu.memory_space<vmem>>, vector<8x128xbf16>
    %cst_6 = arith.constant dense<0.000000e+00> : vector<8x128xf32>
    %14 = tpu.matmul %13, %12, %cst_6 {dimension_numbers = #tpu.dot_dimension_numbers<[1], [1], [0], [0], [0, 0, 1, 0], [], []>} : vector<8x128xbf16>, vector<128x128xbf16>, vector<8x128xf32> -> vector<8x128xf32>
    %15 = arith.mulf %14, %14 : vector<8x128xf32>
    %cst_7 = arith.constant 1.000000e+00 : f32
    %16 = vector.broadcast %cst_7 : f32 to vector<8x128xf32>
    %17 = arith.subf %16, %15 : vector<8x128xf32>
    %cst_8 = arith.constant 0.000000e+00 : f32
    %18 = vector.broadcast %cst_8 : f32 to vector<8x128xf32>
    %19 = arith.maximumf %17, %18 : vector<8x128xf32>
    %20 = math.sqrt %19 : vector<8x128xf32>
    %cst_9 = arith.constant 0.87758255 : f32
    %21 = vector.broadcast %cst_9 : f32 to vector<8x128xf32>
    %22 = arith.mulf %14, %21 : vector<8x128xf32>
    %cst_10 = arith.constant 0.47942555 : f32
    %23 = vector.broadcast %cst_10 : f32 to vector<8x128xf32>
    %24 = arith.mulf %20, %23 : vector<8x128xf32>
    %25 = arith.subf %22, %24 : vector<8x128xf32>
    %cst_11 = arith.constant -0.87758255 : f32
    %26 = vector.broadcast %cst_11 : f32 to vector<8x128xf32>
    %27 = arith.cmpf ogt, %14, %26 : vector<8x128xf32>
    %cst_12 = arith.constant 0.239712775 : f32
    %28 = vector.broadcast %cst_12 : f32 to vector<8x128xf32>
    %29 = arith.subf %14, %28 : vector<8x128xf32>
    %30 = arith.select %27, %25, %29 : vector<8x128xi1>, vector<8x128xf32>
    %c0_13 = arith.constant 0 : index
    %c0_14 = arith.constant 0 : index
    %31 = vector.load %arg4[%c0_13, %c0_14] : memref<8x1xi32, #tpu.memory_space<vmem>>, vector<8x1xi32>
    %c128_i32 = arith.constant 128 : i32
    %32 = arith.muli %arg1, %c128_i32 : i32
    %33 = tpu.iota {dimensions = array<i32: 1>} : vector<8x128xi32>
    %34 = vector.broadcast %32 : i32 to vector<8x128xi32>
    %35 = arith.addi %34, %33 : vector<8x128xi32>
    %36 = vector.broadcast %31 : vector<8x1xi32> to vector<8x128xi32>
    %37 = arith.cmpi eq, %35, %36 : vector<8x128xi32>
    %38 = arith.select %37, %30, %14 : vector<8x128xi1>, vector<8x128xf32>
    %cst_15 = arith.constant 6.400000e+01 : f32
    %39 = vector.broadcast %cst_15 : f32 to vector<8x128xf32>
    %40 = arith.mulf %38, %39 : vector<8x128xf32>
    %c16_i32 = arith.constant 16 : i32
    %41 = vector.broadcast %c16_i32 : i32 to vector<8x128xi32>
    %42 = arith.cmpi slt, %35, %41 : vector<8x128xi32>
    %cst_16 = arith.constant -1.000000e+30 : f32
    %43 = vector.broadcast %cst_16 : f32 to vector<8x128xf32>
    %44 = arith.select %42, %40, %43 : vector<8x128xi1>, vector<8x128xf32>
    %c0_17 = arith.constant 0 : index
    %c0_18 = arith.constant 0 : index
    %45 = vector.load %arg7[%c0_17, %c0_18] : memref<8x1xf32, #tpu.memory_space<vmem>>, vector<8x1xf32>
    %cst_19 = arith.constant dense<0xFF800000> : vector<8xf32>
    %46 = vector.multi_reduction <maximumf>, %44, %cst_19 [1] : vector<8x128xf32> to vector<8xf32>
    %47 = vector.shape_cast %46 : vector<8xf32> to vector<8x1xf32>
    %48 = arith.maximumf %45, %47 : vector<8x1xf32>
    %49 = arith.subf %45, %48 : vector<8x1xf32>
    %50 = math.exp %49 : vector<8x1xf32>
    %c0_20 = arith.constant 0 : index
    %c0_21 = arith.constant 0 : index
    %51 = vector.load %arg8[%c0_20, %c0_21] : memref<8x1xf32, #tpu.memory_space<vmem>>, vector<8x1xf32>
    %52 = arith.mulf %50, %51 : vector<8x1xf32>
    %53 = vector.broadcast %48 : vector<8x1xf32> to vector<8x128xf32>
    %54 = arith.subf %44, %53 : vector<8x128xf32>
    %55 = math.exp %54 : vector<8x128xf32>
    %cst_22 = arith.constant dense<0.000000e+00> : vector<8xf32>
    %56 = vector.multi_reduction <add>, %55, %cst_22 [1] : vector<8x128xf32> to vector<8xf32>
    %57 = vector.shape_cast %56 : vector<8xf32> to vector<8x1xf32>
    %58 = arith.addf %52, %57 : vector<8x1xf32>
    %c0_23 = arith.constant 0 : index
    %c0_24 = arith.constant 0 : index
    %59 = vector.load %arg8[%c0_23, %c0_24] : memref<8x1xf32, #tpu.memory_space<vmem>>, vector<8x1xf32>
    tpu.vector_store %arg8[%c0_23, %c0_24], %58 {strides = array<i32>} : memref<8x1xf32, #tpu.memory_space<vmem>>, vector<8x1xf32>,
    %c0_25 = arith.constant 0 : index
    %c0_26 = arith.constant 0 : index
    %60 = vector.load %arg9[%c0_25, %c0_26] : memref<8x1xf32, #tpu.memory_space<vmem>>, vector<8x1xf32>
    %cst_27 = arith.constant 0.000000e+00 : f32
    %61 = vector.broadcast %cst_27 : f32 to vector<8x128xf32>
    %62 = arith.select %37, %44, %61 : vector<8x128xi1>, vector<8x128xf32>
    %cst_28 = arith.constant dense<0.000000e+00> : vector<8xf32>
    %63 = vector.multi_reduction <add>, %62, %cst_28 [1] : vector<8x128xf32> to vector<8xf32>
    %64 = vector.shape_cast %63 : vector<8xf32> to vector<8x1xf32>
    %65 = arith.addf %60, %64 : vector<8x1xf32>
    %c0_29 = arith.constant 0 : index
    %c0_30 = arith.constant 0 : index
    %66 = vector.load %arg9[%c0_29, %c0_30] : memref<8x1xf32, #tpu.memory_space<vmem>>, vector<8x1xf32>
    tpu.vector_store %arg9[%c0_29, %c0_30], %65 {strides = array<i32>} : memref<8x1xf32, #tpu.memory_space<vmem>>, vector<8x1xf32>,
    %c0_31 = arith.constant 0 : index
    %c0_32 = arith.constant 0 : index
    %67 = vector.load %arg7[%c0_31, %c0_32] : memref<8x1xf32, #tpu.memory_space<vmem>>, vector<8x1xf32>
    tpu.vector_store %arg7[%c0_31, %c0_32], %48 {strides = array<i32>} : memref<8x1xf32, #tpu.memory_space<vmem>>, vector<8x1xf32>,
    %c0_i32_33 = arith.constant 0 : i32
    %68 = arith.cmpi eq, %arg1, %c0_i32_33 : i32
    %69 = arith.extui %68 : i1 to i32
    %c0_i32_34 = arith.constant 0 : i32
    %70 = arith.cmpi ne, %69, %c0_i32_34 : i32
    scf.if %70 {
      %c0_35 = arith.constant 0 : index
      %c0_36 = arith.constant 0 : index
      %71 = vector.load %arg7[%c0_35, %c0_36] : memref<8x1xf32, #tpu.memory_space<vmem>>, vector<8x1xf32>
      %c0_37 = arith.constant 0 : index
      %c0_38 = arith.constant 0 : index
      %72 = vector.load %arg8[%c0_37, %c0_38] : memref<8x1xf32, #tpu.memory_space<vmem>>, vector<8x1xf32>
      %73 = math.log %72 : vector<8x1xf32>
      %74 = arith.addf %71, %73 : vector<8x1xf32>
      %c0_39 = arith.constant 0 : index
      %c0_40 = arith.constant 0 : index
      %75 = vector.load %arg9[%c0_39, %c0_40] : memref<8x1xf32, #tpu.memory_space<vmem>>, vector<8x1xf32>
      %76 = arith.subf %74, %75 : vector<8x1xf32>
      %c0_41 = arith.constant 0 : index
      %c0_42 = arith.constant 0 : index
      %77 = vector.load %arg5[%c0_41, %c0_42] : memref<8x1xf32, #tpu.memory_space<vmem>>, vector<8x1xf32>
      tpu.vector_store %arg5[%c0_41, %c0_42], %76 {strides = array<i32>} : memref<8x1xf32, #tpu.memory_space<vmem>>, vector<8x1xf32>,
    } else {
    }
    return
  }
  func.func @transform_0(%arg0: i32, %arg1: i32) -> (i32, i32) {
    %c0_i32 = arith.constant 0 : i32
    %c0_i32_0 = arith.constant 0 : i32
    return %arg0, %c0_i32 : i32, i32
  }
  func.func @transform_1(%arg0: i32, %arg1: i32) -> (i32, i32) {
    %c0_i32 = arith.constant 0 : i32
    %c0_i32_0 = arith.constant 0 : i32
    return %arg1, %c0_i32 : i32, i32
  }
  func.func @transform_2(%arg0: i32, %arg1: i32) -> (i32, i32) {
    %c0_i32 = arith.constant 0 : i32
    %c0_i32_0 = arith.constant 0 : i32
    return %arg0, %c0_i32 : i32, i32
  }
  func.func @transform_3(%arg0: i32, %arg1: i32) -> (i32, i32) {
    %c0_i32 = arith.constant 0 : i32
    %c0_i32_0 = arith.constant 0 : i32
    return %arg0, %c0_i32 : i32, i32
  }
}

</mosaic_0001>

<bundles_post_ra>
// kernel: tpu_custom_call.1
= control target key start
LH: loop header
LB: loop body
LE: loop exit
PB: predicated region body
PF: predicated region fallthrough
CT: control target
= control target key end

     0   :  { %8 = vsyncpa [#allocation7], 0  ;;  %s387_s12 = smov [#allocation6]   ;;  %s538_s0 = inlined_call_operand.vmem [shape: f32[8,128], index: 0, kind: input, shape index: {}]   ;;  %s539_s1 = inlined_call_operand.hbm [shape: f32[128,128], index: 1, kind: input, shape index: {}]   ;;  %s540_s2 = inlined_call_operand.vmem [shape: s32[8,1], index: 2, kind: input, shape index: {}]   ;;  %s541_s3 = inlined_call_operand.vmem [shape: f32[8,1], index: 3, kind: output, shape index: {}]  }
   0x1   :  { %s16_s13 = sshll.u32 %s387_s12, 4  ;;  %s363_s16 = scalar_lea.hbm %s539_s1, 2048  ;;  %s17_s13 = int_to_ptr.vmem [resolvable:$true] %s16_s13 }
   0x2   :  { %p364_p0 = scmp.ne.s32.totalorder %s539_s1, %s363_s16  ;;  %p367_p1 = scmp.lt.u32.totalorder %s363_s16, %s539_s1 }
   0x4   :  { %p369_p2 = pnand %p367_p1, %p364_p0 }
   0x6   :  { %372 = shalt.err (!%p369_p2)
}
   0x7   :  { %s373_s21 = scalar_lea.vmem %s17_s13, 2048  ;;  %p378_p4 = scmp.lt.s32.totalorder %s17_s13, %s17_s13 }
   0x8   :  { %p374_p3 = scmp.ne.s32.totalorder %s17_s13, %s373_s21  ;;  %p379_p5 = scmp.lt.s32.totalorder %s373_s21, %s373_s21 }
   0xa   :  { %p380_p6 = por %p379_p5, %p378_p4 }
   0xc   :  { %p381_p7 = pnand %p380_p6, %p374_p3 }
   0xe   :  { %384 = shalt.err (!%p381_p7)
}
   0xf   :  { %s388_s22 = smov 128   ;;  %s389_s23 = smov 8  }
  0x10   :  { %22 = dma.hbm_to_vmem [thread:$0]  %s539_s1, 2048, %s17_s13, [#allocation7], %s388_s22, %s388_s22, %s389_s23  }
  0x11   :  { %385 = dma.done.wait [#allocation7], 2048  }
  0x12   :  { %386 = vsyncadd [#allocation7], 4294965248  ;;  %v426_v0 = vld [vmem:[#allocation6] sm:$0xff]  ;;  %v428_v1 = vld [vmem:[#allocation6 + $0x10] sm:$0xff]  ;;  %v390_v33 = vmov 0.0   ;;  %vm391_vm0 = vmmov 0  }
  0x13   :  { %v430_v2 = vld [vmem:[#allocation6 + $0x8] sm:$0xff]  ;;  %v62_v3 = vmul.f32 %v426_v0, %v426_v0  ;;  %v64_v4 = vmul.f32 %v428_v1, %v428_v1  ;;  %v436_v5 = vld [vmem:[#allocation6 + $0x18] sm:$0xff]  ;;  %v444_v9 = vld [vmem:[#allocation6 + $0x20] sm:$0xff]  ;;  %292 = vmatprep.subr.bf16.mxu0 %v390_v33  ;;  %308 = vmatprep.mubr.msk.bf16.mxu0 %vm391_vm0, %v390_v33  ;;  %v392_v36 = vmov 0   ;;  %vm42_vm1 = vcmask 7168  }
  0x14   :  { %v63_v6 = vmul.f32 %v430_v2, %v430_v2  ;;  %v65_v7 = vmul.f32 %v436_v5, %v436_v5  ;;  %v442_v8 = vld [vmem:[#allocation6 + $0x28] sm:$0xff]  ;;  %v66_v11 = vmul.f32 %v444_v9, %v444_v9  ;;  %v450_v12 = vld [vmem:[#allocation6 + $0x38] sm:$0xff]  ;;  %v452_v13 = vld [vmem:[#allocation6 + $0x30] sm:$0xff]  ;;  %319 = vset.pattern.permute.xlu1 %v392_v36  ;;  %320 = vset.pattern.permute.xlu0 %v392_v36 }
  0x15   :  { %78 = vadd.xlane.f32.xlu0 %v62_v3  ;;  %82 = vadd.xlane.f32.xlu1 %v64_v4  ;;  %v67_v10 = vmul.f32 %v442_v8, %v442_v8  ;;  %v69_v14 = vmul.f32 %v450_v12, %v450_v12  ;;  %v68_v15 = vmul.f32 %v452_v13, %v452_v13  ;;  %v458_v16 = vld [vmem:[#allocation6 + $0x48] sm:$0xff]  ;;  %v460_v17 = vld [vmem:[#allocation6 + $0x40] sm:$0xff]  ;;  %v466_v20 = vld [vmem:[#allocation6 + $0x58] sm:$0xff] }
  0x16   :  { %v71_v18 = vmul.f32 %v458_v16, %v458_v16  ;;  %v70_v19 = vmul.f32 %v460_v17, %v460_v17  ;;  %v468_v21 = vld [vmem:[#allocation6 + $0x50] sm:$0xff]  ;;  %v73_v22 = vmul.f32 %v466_v20, %v466_v20  ;;  %v474_v24 = vld [vmem:[#allocation6 + $0x68] sm:$0xff]  ;;  %v476_v25 = vld [vmem:[#allocation6 + $0x60] sm:$0xff]  ;;  %44 = vst.msk [vmem:[#allocation4] sm:$0xff] %vm42_vm1, %v390_v33 }
  0x17   :  { %v72_v23 = vmul.f32 %v468_v21, %v468_v21  ;;  %v75_v26 = vmul.f32 %v474_v24, %v474_v24  ;;  %v74_v27 = vmul.f32 %v476_v25, %v476_v25  ;;  %v485_v28 = vld [vmem:[%s538_s0] sm:$0xff]  ;;  %v487_v29 = vld [vmem:[#allocation6 + $0x70] sm:$0xff]  ;;  %v493_v32 = vld [vmem:[#allocation6 + $0x78] sm:$0xff]  ;;  %45 = vst.msk [vmem:[#allocation5] sm:$0xff] %vm42_vm1, %v390_v33 }
  0x18   :  { %v34_v30 = vmul.f32 %v485_v28, %v485_v28  ;;  %v76_v31 = vmul.f32 %v487_v29, %v487_v29  ;;  %v77_v34 = vmul.f32 %v493_v32, %v493_v32  ;;  %v223_v35 = vld [vmem:[%s540_s2] sm:$0xff] }
  0x19   :  { %80 = vadd.xlane.f32.xlu0 %v63_v6  ;;  %84 = vadd.xlane.f32.xlu1 %v65_v7 }
  0x1d   :  { %88 = vadd.xlane.f32.xlu1 %v67_v10  ;;  %86 = vadd.xlane.f32.xlu0 %v66_v11 }
  0x21   :  { %92 = vadd.xlane.f32.xlu1 %v69_v14  ;;  %90 = vadd.xlane.f32.xlu0 %v68_v15 }
  0x25   :  { %96 = vadd.xlane.f32.xlu1 %v71_v18  ;;  %94 = vadd.xlane.f32.xlu0 %v70_v19 }
  0x29   :  { %100 = vadd.xlane.f32.xlu1 %v73_v22  ;;  %98 = vadd.xlane.f32.xlu0 %v72_v23 }
  0x2d   :  { %104 = vadd.xlane.f32.xlu1 %v75_v26  ;;  %102 = vadd.xlane.f32.xlu0 %v74_v27 }
  0x31   :  { %35 = vadd.xlane.f32.xlu0 %v34_v30  ;;  %106 = vadd.xlane.f32.xlu1 %v76_v31 }
  0x35   :  { %108 = vadd.xlane.f32.xlu0 %v77_v34 }
  0x42   :  { %230 = vperm.xlu1 %319, %v223_v35  }
  0xa2   :  { %v79_v37 = vpop.xlane.xlu0 %78  ;;  %v83_v38 = vpop.xlane.xlu1 %82 }
  0xa3   :  { %v110_v39 = vmax.f32 %v79_v37, 1e-24  ;;  %v112_v43 = vmax.f32 %v83_v38, 1e-24 }
  0xa5   :  { %321 = vrsqrt.f32 %v110_v39 }
  0xa6   :  { %v81_v40 = vpop.xlane.xlu0 %80  ;;  %v85_v41 = vpop.xlane.xlu1 %84 }
  0xa7   :  { %v111_v42 = vmax.f32 %v81_v40, 1e-24  ;;  %v113_v44 = vmax.f32 %v85_v41, 1e-24 }
  0xa9   :  { %323 = vrsqrt.f32 %v111_v42 }
  0xaa   :  { %v87_v45 = vpop.xlane.xlu0 %86  ;;  %v89_v46 = vpop.xlane.xlu1 %88  ;;  %325 = vrsqrt.f32 %v112_v43 }
  0xab   :  { %327 = vrsqrt.f32 %v113_v44  ;;  %v115_v47 = vmax.f32 %v89_v46, 1e-24  ;;  %v114_v49 = vmax.f32 %v87_v45, 1e-24 }
  0xad   :  { %329 = vrsqrt.f32 %v115_v47 }
  0xae   :  { %v91_v48 = vpop.xlane.xlu0 %90  ;;  %331 = vrsqrt.f32 %v114_v49  ;;  %v93_v53 = vpop.xlane.xlu1 %92 }
  0xaf   :  { %v322_v50 = vpop.eup %321  ;;  %v117_v58 = vmax.f32 %v93_v53, 1e-24  ;;  %v116_v61 = vmax.f32 %v91_v48, 1e-24 }
  0xb0   :  { %v142_v54 = vmul.f32 %v322_v50, %v426_v0 }
  0xb1   :  { %333 = vrsqrt.f32 %v117_v58 }
  0xb2   :  { %v95_v51 = vpop.xlane.xlu0 %94  ;;  %335 = vrsqrt.f32 %v116_v61  ;;  %v97_v4 = vpop.xlane.xlu1 %96 }
  0xb3   :  { %v324_v52 = vpop.eup %323  ;;  %v119_v7 = vmax.f32 %v97_v4, 1e-24  ;;  %v118_v11 = vmax.f32 %v95_v51, 1e-24 }
  0xb4   :  { %v143_v55 = vmul.f32 %v324_v52, %v430_v2  ;;  %v326_v56 = vpop.eup %325 }
  0xb5   :  { %v328_v60 = vpop.eup %327  ;;  %v144_v62 = vmul.f32 %v326_v56, %v428_v1 }
  0xb6   :  { %v158_v57 = vpack.c.bf16 %v143_v55, %v142_v54  ;;  %v99_v59 = vpop.xlane.xlu0 %98  ;;  %v145_v63 = vmul.f32 %v328_v60, %v436_v5  ;;  %v101_v1 = vpop.xlane.xlu1 %100  ;;  %v225_v60 = vlaneseq }
  0xb7   :  { %v330_v0 = vpop.eup %329  ;;  %v121_v23 = vmax.f32 %v101_v1, 1e-24  ;;  %v120_v26 = vmax.f32 %v99_v59, 1e-24 }
  0xb8   :  { %293 = vmatpush3.bf16.xpose.msra.mxu0 %v158_v57  ;;  %v332_v6 = vpop.eup %331  ;;  %v159_v2 = vpack.c.bf16 %v145_v63, %v144_v62  ;;  %v147_v18 = vmul.f32 %v330_v0, %v442_v8 }
  0xb9   :  { %294 = vmatprep.subr.bf16.mxu0 %v390_v33  ;;  %v146_v15 = vmul.f32 %v332_v6, %v444_v9 }
  0xba   :  { %v103_v3 = vpop.xlane.xlu0 %102  ;;  %v105_v9 = vpop.xlane.xlu1 %104 }
  0xbb   :  { %v334_v5 = vpop.eup %333  ;;  %v160_v19 = vpack.c.bf16 %v147_v18, %v146_v15  ;;  %v123_v37 = vmax.f32 %v105_v9, 1e-24  ;;  %v122_v39 = vmax.f32 %v103_v3, 1e-24  ;;  %v226_v3 = vand.u32 127, %v225_v60  ;;  %v259_v9 = vld [vmem:[#allocation5] sm:$0xff] }
  0xbc   :  { %v336_v22 = vpop.eup %335  ;;  %v149_v30 = vmul.f32 %v334_v5, %v450_v12 }
  0xbd   :  { %v148_v27 = vmul.f32 %v336_v22, %v452_v13  ;;  %vm235_vm6 = vcmp.lt.s32.totalorder %v226_v3, 16 }
  0xbe   :  { %v36_v10 = vpop.xlane.xlu0 %35  ;;  %v107_v12 = vpop.xlane.xlu1 %106 }
  0xbf   :  { %v37_v14 = vmax.f32 %v36_v10, 1e-24  ;;  %v161_v34 = vpack.c.bf16 %v149_v30, %v148_v27 }
  0xc0   :  { %295 = vmatpush3.bf16.xpose.msra.mxu0 %v159_v2 }
  0xc1   :  { %296 = vmatprep.subr.bf16.mxu0 %v390_v33  ;;  %337 = vrsqrt.f32 %v37_v14 }
  0xc2   :  { %339 = vrsqrt.f32 %v119_v7  ;;  %v109_v43 = vpop.xlane.xlu0 %108  ;;  %v231_v0 = vpop.permute.xlu1 %230 }
  0xc3   :  { %341 = vrsqrt.f32 %v118_v11  ;;  %v125_v45 = vmax.f32 %v109_v43, 1e-24  ;;  %vm232_vm4 = vcmp.eq.s32.totalorder %v226_v3, %v231_v0 }
  0xc4   :  { %343 = vrsqrt.f32 %v121_v23 }
  0xc5   :  { %345 = vrsqrt.f32 %v120_v26 }
  0xc6   :  { %347 = vrsqrt.f32 %v123_v37  ;;  %v244_v37 = vld [vmem:[#allocation4] sm:$0xff] }
  0xc7   :  { %349 = vrsqrt.f32 %v122_v39 }
  0xc8   :  { %297 = vmatpush3.bf16.xpose.msra.mxu0 %v160_v19 }
  0xc9   :  { %298 = vmatprep.subr.bf16.mxu0 %v390_v33 }
  0xcb   :  { %v338_v8 = vpop.eup %337 }
  0xcc   :  { %v340_v31 = vpop.eup %339  ;;  %v39_v35 = vmul.f32 %v338_v8, %v485_v28  ;;  %v124_v28 = vmax.f32 %v107_v12, 1e-24 }
  0xcd   :  { %v342_v36 = vpop.eup %341  ;;  %v151_v13 = vmul.f32 %v340_v31, %v458_v16 }
  0xce   :  { %v40_v38 = vpack.c.bf16 %v39_v35, %v39_v35  ;;  %v150_v40 = vmul.f32 %v342_v36, %v460_v17  ;;  %v344_v41 = vpop.eup %343  ;;  %351 = vrsqrt.f32 %v124_v28 }
  0xcf   :  { %v346_v44 = vpop.eup %345  ;;  %v153_v47 = vmul.f32 %v344_v41, %v466_v20  ;;  %353 = vrsqrt.f32 %v125_v45 }
  0xd0   :  { %299 = vmatpush3.bf16.xpose.msra.mxu0 %v161_v34  ;;  %41 = vst [vmem:[#allocation2] sm:$0xf] %v40_v38  ;;  %v162_v42 = vpack.c.bf16 %v151_v13, %v150_v40  ;;  %v152_v46 = vmul.f32 %v346_v44, %v468_v21  ;;  %v348_v16 = vpop.eup %347 }
  0xd1   :  { %300 = vmatprep.subr.bf16.mxu0 %v390_v33  ;;  %v350_v48 = vpop.eup %349  ;;  %v155_v50 = vmul.f32 %v348_v16, %v474_v24 }
  0xd2   :  { %v163_v17 = vpack.c.bf16 %v153_v47, %v152_v46  ;;  %v154_v49 = vmul.f32 %v350_v48, %v476_v25  ;;  %v393_v25 = vmov -1e+30  }
  0xd3   :  { %43 = vst.msk [vmem:[#allocation3] sm:$0xff] %vm42_vm1, %v393_v25 }
  0xd4   :  { %v164_v52 = vpack.c.bf16 %v155_v50, %v154_v49 }
  0xd7   :  { %v166_v55 = vld [vmem:[#allocation2] sm:$0xf] }
  0xd8   :  { %301 = vmatpush3.bf16.xpose.msra.mxu0 %v162_v42  ;;  %v352_v51 = vpop.eup %351 }
  0xd9   :  { %302 = vmatprep.subr.bf16.mxu0 %v390_v33  ;;  %v354_v53 = vpop.eup %353  ;;  %v156_v20 = vmul.f32 %v352_v51, %v487_v29 }
  0xda   :  { %v157_v21 = vmul.f32 %v354_v53, %v493_v32  ;;  %v237_v1 = vld [vmem:[#allocation3] sm:$0xff] }
  0xdc   :  { %v165_v54 = vpack.c.bf16 %v157_v21, %v156_v20 }
  0xe0   :  { %303 = vmatpush3.bf16.xpose.msra.mxu0 %v163_v17 }
  0xe1   :  { %304 = vmatprep.subr.bf16.mxu0 %v390_v33 }
  0xe8   :  { %305 = vmatpush3.bf16.xpose.msra.mxu0 %v164_v52 }
  0xe9   :  { %306 = vmatprep.subr.bf16.mxu0 %v390_v33 }
  0xf0   :  { %307 = vmatpush3.bf16.xpose.msra.mxu0 %v165_v54 }
  0xf7   :  { %309 = vmatmul.mubr.bf16.vlgmr.msra.gmra.mrb[0].mxu0 %v166_v55 }
 0x1ca   :  { %v201_v24 = vpop.f32.mrb[0].mxu0 }
 0x1cb   :  { %v207_v29 = vmul.f32 %v201_v24, %v201_v24  ;;  %v310_v56 = vpop.f32.mrb[1].mxu0  ;;  %v217_v2 = vmul.f32 0.87758255, %v201_v24  ;;  %v282_v7 = vadd.f32 -0.23971277, %v201_v24 }
 0x1cc   :  { %v204_v32 = vpop.f32.mrb[2].mxu0  ;;  %vm220_vm5 = vcmp.gt.f32.partialorder %v201_v24, -0.87758255 }
 0x1cd   :  { %v208_v57 = vsub.f32 1.0, %v207_v29  ;;  %v311_v58 = vpop.f32.mrb[3].mxu0 }
 0x1cf   :  { %v209_v59 = vmax.f32 %v208_v57, 0.0 }
 0x1d1   :  { %355 = vrsqrt.f32 %v209_v59  ;;  %vm212_vm2 = vcmp.eq.f32.partialorder %v209_v59, inf  ;;  %v215_v63 = vand.u32 2147483648, %v209_v59  ;;  %vm214_vm3 = vcmp.eq.f32.partialorder %v209_v59, 0.0 }
 0x1db   :  { %v356_v61 = vpop.eup %355 }
 0x1dc   :  { %v211_v62 = vmul.f32 %v356_v61, %v209_v59 }
 0x1de   :  { %v213_v4 = vsel %vm212_vm2, %v209_v59, %v211_v62 }
 0x1df   :  { %v216_v6 = vsel %vm214_vm3, %v215_v63, %v213_v4 }
 0x1e0   :  { %v218_v33 = vmul.f32 0.47942555, %v216_v6 }
 0x1e2   :  { %v219_v10 = vsub.f32 %v217_v2, %v218_v33 }
 0x1e4   :  { %v222_v11 = vsel %vm220_vm5, %v219_v10, %v282_v7 }
 0x1e5   :  { %v233_v14 = vsel %vm232_vm4, %v222_v11, %v201_v24 }
 0x1e6   :  { %v234_v15 = vmul.f32 64.0, %v233_v14 }
 0x1e8   :  { %v236_v18 = vsel %vm235_vm6, %v234_v15, -1e+30 }
 0x1e9   :  { %238 = vmax.xlane.f32.xlu0 %v236_v18  ;;  %v260_v23 = vsel %vm232_vm4, %v236_v18, 0.0 }
 0x276   :  { %v239_v5 = vpop.xlane.xlu0 %238 }
 0x277   :  { %v240_v19 = vmax.f32 %v237_v1, %v239_v5 }
 0x279   :  { %v241_v22 = vsub.f32 %v237_v1, %v240_v19  ;;  %265 = vst.msk [vmem:[#allocation3] sm:$0xff] %vm42_vm1, %v240_v19  ;;  %248 = vperm.xlu0 %320, %v240_v19  }
 0x27b   :  { %v242_v35 = vmul.f32 1.442695, %v241_v22 }
 0x280   :  { %v269_v42 = vld [vmem:[#allocation3] sm:$0xff] }
 0x298   :  { %261 = vadd.xlane.f32.xlu0 %v260_v23 }
 0x2f8   :  { %v249_v26 = vpop.permute.xlu0 %248 }
 0x2f9   :  { %v251_v27 = vsub.f32 %v236_v18, %v249_v26 }
 0x2fb   :  { %v252_v30 = vmul.f32 1.442695, %v251_v27 }
 0x2fd   :  { %357 = vpow2.f32 %v252_v30 }
 0x2fe   :  { %359 = vpow2.f32 %v242_v35 }
 0x307   :  { %v358_v8 = vpop.eup %357 }
 0x308   :  { %254 = vadd.xlane.f32.xlu1 %v358_v8  ;;  %v360_v36 = vpop.eup %359 }
 0x309   :  { %v245_v38 = vmul.f32 %v360_v36, %v244_v37 }
 0x325   :  { %v262_v31 = vpop.xlane.xlu0 %261 }
 0x326   :  { %v263_v34 = vadd.f32 %v262_v31, %v259_v9 }
 0x328   :  { %264 = vst.msk [vmem:[#allocation5] sm:$0xff] %vm42_vm1, %v263_v34 }
 0x32f   :  { %v274_v44 = vld [vmem:[#allocation5] sm:$0xff] }
 0x395   :  { %v255_v39 = vpop.xlane.xlu1 %254 }
 0x396   :  { %v256_v40 = vadd.f32 %v255_v39, %v245_v38 }
 0x398   :  { %258 = vst.msk [vmem:[#allocation4] sm:$0xff] %vm42_vm1, %v256_v40 }
 0x39f   :  { %v270_v13 = vld [vmem:[#allocation4] sm:$0xff] }
 0x3a0   :  { %361 = vlog2.f32 %v270_v13 }
 0x3aa   :  { %v362_v12 = vpop.eup %361 }
 0x3ab   :  { %v272_v41 = vmul.f32 0.6931472, %v362_v12 }
 0x3ad   :  { %v273_v43 = vadd.f32 %v272_v41, %v269_v42 }
 0x3af   :  { %v275_v28 = vsub.f32 %v273_v43, %v274_v44 }
 0x3b1   :  { %276 = vst.msk [vmem:[%s541_s3] sm:$0xff] %vm42_vm1, %v275_v28 }
 0x3b2   :  { %281 = vsyncpa [#allocation7], 1 }

</bundles_post_ra>
